<compile_context>
chip_gen: v5e
topology: v5e:2x2
jax: 0.10.0
libtpu: 0.0.40
codegen_flags: <defaults>
</compile_context>

<pallas_src>
import jax
import jax.numpy as jnp
from jax.experimental import pallas as pl
from jax.experimental.pallas import tpu as pltpu


# ----------------------------------------------------------------------------
# Kernel
# ----------------------------------------------------------------------------
def fovea_kernel(x_ref, o_ref):
    # x_ref / o_ref: (ROWS, HW) tile; row-wise softmax over the lane axis,
    # then multiply elementwise by x.
    x = x_ref[...]
    xf = x.astype(jnp.float32)
    m = jnp.max(xf, axis=-1, keepdims=True)           # numerically stable softmax
    e = jnp.exp(xf - m)
    s = jnp.sum(e, axis=-1, keepdims=True)
    # Exact per-row reciprocal: kernel is HBM-bound, divide is hidden; keeps
    # tight agreement with jax.nn.softmax.
    mask = e * pl.reciprocal(s, approx=False)
    o_ref[...] = (mask * xf).astype(o_ref.dtype)


# ----------------------------------------------------------------------------
# Tiling helpers
# ----------------------------------------------------------------------------
def _sublane_pack(itemsize):
    # Minimum sublane multiple per element width (f32: 8, bf16: 16, int8: 32).
    return {4: 8, 2: 16, 1: 32}.get(itemsize, 8)


def _tpu_vmem_capacity():
    """Physical VMEM bytes (fallback to the conservative 64 MiB v7x figure)."""
    try:
        info = pltpu.get_tpu_info()
        cap = int(getattr(info, "vmem_capacity_bytes", 0))
        if cap > 0:
            return cap
    except Exception:
        pass
    return 64 << 20


def _choose_rows(total_rows, hw, itemsize, target_bytes, even_steps):
    """Row tile so each (rows, hw) input block is ~target_bytes, sublane-aligned.

    If even_steps (2-TensorCore chips), round the step count up to an even
    number so the parallel grid splits evenly across both cores and the last
    block is not a small remainder.
    """
    pack = _sublane_pack(itemsize)
    if total_rows <= pack:
        # Block dim equal to the full array dim is always legal.
        return total_rows

    row_bytes = max(1, hw * itemsize)
    total_bytes = total_rows * row_bytes
    n_steps = max(1, pl.cdiv(total_bytes, target_bytes))
    if even_steps and (n_steps % 2):
        n_steps += 1

    rows = pl.cdiv(total_rows, n_steps)
    rows = max(pack, ((rows + pack - 1) // pack) * pack)      # sublane-align
    rows = min(rows, ((total_rows + pack - 1) // pack) * pack)
    return rows


# ----------------------------------------------------------------------------
# Wrapper
# ----------------------------------------------------------------------------
_SMALL_BYTES = 256 * 1024  # below this, fused XLA elementwise+reduce wins.


def _fovea_jnp(x):
    b, c, h, w = x.shape
    xf = x.reshape(b, c, h * w)
    mask = jax.nn.softmax(xf, axis=-1)
    return (mask * xf).reshape(b, c, h, w)


def fovea_forward(x, smooth=True, force_pallas=False, donate_input=False):
    """Pallas implementation of Fovea.forward. x: (b, c, h, w).

    The module's stms parameter (zeros(1) + 10.0) is never used in forward:
    PyTorch multiplies by the *bool* self.smooth, so softmax(x * True) ==
    softmax(x) == the smooth=False branch.  `smooth` is therefore a no-op for
    the math and kept only for interface parity.
    """
    del smooth  # forward math is identical for smooth=True/False (see above)

    b, c, h, w = x.shape
    hw = h * w
    total_rows = b * c
    itemsize = jnp.dtype(x.dtype).itemsize
    total_bytes = total_rows * hw * itemsize

    # Fast path: tiny inputs (launch overhead dominates) or narrow lane dims
    # (hw < 128 would force masked partial stores).
    if hw < 128 or (not force_pallas and total_bytes < _SMALL_BYTES):
        return _fovea_jnp(x)

    x2 = x.reshape(total_rows, hw)

    # Generation-aware block / VMEM budgeting.
    vmem_cap = _tpu_vmem_capacity()
    if vmem_cap >= (100 << 20):
        # 128 MiB-VMEM parts (v5e / v6e): big blocks, generous scoped limit.
        target_bytes = 8 << 20
        vmem_cap_limit = 96 << 20
        even_steps = False
    else:
        # 64 MiB-VMEM parts (v7x, 2 TensorCores): ~6 MiB blocks, even grid
        # split so neither core idles, limit well under physical VMEM.
        target_bytes = 6 << 20
        vmem_cap_limit = 56 << 20
        even_steps = True

    rows = _choose_rows(total_rows, hw, itemsize, target_bytes, even_steps)
    grid = (pl.cdiv(total_rows, rows),)

    # VMEM budget: double-buffered input + output blocks plus ~3 tile-sized
    # f32 intermediates (xf, e, mask), with headroom.
    block_in_bytes = rows * hw * itemsize
    block_f32_bytes = rows * hw * 4
    vmem_needed = 4 * block_in_bytes + 3 * block_f32_bytes + (8 << 20)
    vmem_limit = int(min(max(vmem_needed, 32 << 20), vmem_cap_limit))

    cost = pl.CostEstimate(
        flops=4 * total_rows * hw,
        transcendentals=total_rows * hw,
        bytes_accessed=2 * total_bytes,
    )

    kwargs = {}
    if donate_input:
        # Caller guarantees x is dead after this call: reuse its HBM buffer.
        kwargs["input_output_aliases"] = {0: 0}

    out = pl.pallas_call(
        fovea_kernel,
        out_shape=jax.ShapeDtypeStruct((total_rows, hw), x.dtype),
        grid_spec=pltpu.PrefetchScalarGridSpec(
            num_scalar_prefetch=0,
            grid=grid,
            # hw stays whole on the lane axis (legal even if hw % 128 != 0
            # because the block dim equals the full array dim).
            in_specs=[pl.BlockSpec((rows, hw), lambda i: (i, 0))],
            out_specs=pl.BlockSpec((rows, hw), lambda i: (i, 0)),
        ),
        compiler_params=pltpu.CompilerParams(
            dimension_semantics=("parallel",),
            vmem_limit_bytes=vmem_limit,
        ),
        cost_estimate=cost,
        **kwargs,
    )(x2)

    return out.reshape(b, c, h, w)


def fovea_reference(x):
    return _fovea_jnp(x)


# ----------------------------------------------------------------------------
# Self-test
# ----------------------------------------------------------------------------
if __name__ == "__main__":
    key = jax.random.PRNGKey(0)
    k1, k2, k3 = jax.random.split(key, 3)

    # Case 1: the module's typical small usage -> auto small-shape fast path.
    x1 = jax.random.normal(k1, (2, 4, 16, 16), dtype=jnp.float32)
    out1 = jax.block_until_ready(fovea_forward(x1, smooth=True))
    ref1 = fovea_reference(x1)
    assert out1.shape == (2, 4, 16, 16)
    assert jnp.allclose(out1, ref1, atol=1e-5, rtol=1e-5)

    # Case 2: force the Pallas path on a non-128-multiple spatial size (18x18).
    x2 = jax.random.normal(k2, (2, 96, 18, 18), dtype=jnp.float32)
    out2 = jax.block_until_ready(fovea_forward(x2, smooth=True, force_pallas=True))
    ref2 = fovea_reference(x2)
    assert out2.shape == (2, 96, 18, 18)
    assert jnp.allclose(out2, ref2, atol=1e-5, rtol=1e-5)

    # Case 3: large enough to take the Pallas path automatically (24x24 map).
    x3 = jax.random.normal(k3, (4, 128, 24, 24), dtype=jnp.float32)
    out3 = jax.block_until_ready(fovea_forward(x3, smooth=True))
    ref3 = fovea_reference(x3)
    assert out3.shape == (4, 128, 24, 24)
    assert jnp.allclose(out3, ref3, atol=1e-5, rtol=1e-5)

    print("KERNEL_OK")
</pallas_src>

<mosaic_0001>
module attributes {stable_mosaic.version = 11 : i64} {
  func.func @fovea_kernel(%arg0: i32, %arg1: memref<96x324xf32, #tpu.memory_space<vmem>>, %arg2: memref<96x324xf32, #tpu.memory_space<vmem>>) attributes {dimension_semantics = [#tpu.dimension_semantics<parallel>], iteration_bounds = array<i64: 2>, scalar_prefetch = 0 : i64, scratch_operands = 0 : i64, tpu.core_type = #tpu.core_type<tc>, window_params = [{transform_indices = @transform_0, window_bounds = array<i64: 96, 324>}, {transform_indices = @transform_1, window_bounds = array<i64: 96, 324>}]} {
    %c0 = arith.constant 0 : index
    %c0_0 = arith.constant 0 : index
    %0 = vector.load %arg1[%c0, %c0_0] : memref<96x324xf32, #tpu.memory_space<vmem>>, vector<96x324xf32>
    %cst = arith.constant dense<0xFF800000> : vector<96xf32>
    %1 = vector.multi_reduction <maximumf>, %0, %cst [1] : vector<96x324xf32> to vector<96xf32>
    %2 = vector.shape_cast %1 : vector<96xf32> to vector<96x1xf32>
    %3 = vector.broadcast %2 : vector<96x1xf32> to vector<96x324xf32>
    %4 = arith.subf %0, %3 : vector<96x324xf32>
    %5 = math.exp %4 : vector<96x324xf32>
    %cst_1 = arith.constant dense<0.000000e+00> : vector<96xf32>
    %6 = vector.multi_reduction <add>, %5, %cst_1 [1] : vector<96x324xf32> to vector<96xf32>
    %7 = vector.shape_cast %6 : vector<96xf32> to vector<96x1xf32>
    %8 = tpu.reciprocal %7 : vector<96x1xf32> -> vector<96x1xf32>
    %9 = vector.broadcast %8 : vector<96x1xf32> to vector<96x324xf32>
    %10 = arith.mulf %5, %9 : vector<96x324xf32>
    %11 = arith.mulf %10, %0 : vector<96x324xf32>
    %c0_2 = arith.constant 0 : index
    %c0_3 = arith.constant 0 : index
    %12 = vector.load %arg2[%c0_2, %c0_3] : memref<96x324xf32, #tpu.memory_space<vmem>>, vector<96x324xf32>
    tpu.vector_store %arg2[%c0_2, %c0_3], %11 {strides = array<i32>} : memref<96x324xf32, #tpu.memory_space<vmem>>, vector<96x324xf32>,
    return
  }
  func.func @transform_0(%arg0: i32) -> (i32, i32) {
    %c0_i32 = arith.constant 0 : i32
    %c0_i32_0 = arith.constant 0 : i32
    return %arg0, %c0_i32 : i32, i32
  }
  func.func @transform_1(%arg0: i32) -> (i32, i32) {
    %c0_i32 = arith.constant 0 : i32
    %c0_i32_0 = arith.constant 0 : i32
    return %arg0, %c0_i32 : i32, i32
  }
}

</mosaic_0001>

<bundles_post_ra>
// kernel: tpu_custom_call.1
= control target key start
LH: loop header
LB: loop body
LE: loop exit
PB: predicated region body
PF: predicated region fallthrough
CT: control target
= control target key end

     0   :  { %6 = vsyncpa [#allocation3], 0  ;;  %s1798_s0 = inlined_call_operand.hbm [shape: f32[192,324], index: 0, kind: input, shape index: {}]   ;;  %s1799_s1 = inlined_call_operand.hbm [shape: f32[192,324], index: 1, kind: output, shape index: {}]  }
   0x1   :  { %8 = vsyncpa [#allocation3 + $0x1], 0 }
   0x2   :  { %9 = vsyncpa [#allocation4], 0 }
   0x3   :  { %11 = vsyncpa [#allocation4 + $0x1], 0  ;;  %s1047_s6 = smov 0   ;;  %s1049_s7 = smov 0  }
   0x4   :  { %s1051_s8 = smov 0   ;;  %s1053_s9 = smov 0  }
   0x5 LB: > { %s1068_s10 = sadd.s32 4294967295, %s1031_s9   ;;  %s771_s11 = sadd.s32 4294967294, %s1031_s9   ;;  %s1031_s9 = sphi %s1053_s9, %s1915_s9   ;;  %s1027_s8 = sphi %s1051_s8, %s1914_s8   ;;  %s1023_s7 = sphi %s1049_s7, %s1913_s7   ;;  %s1019_s6 = sphi %s1047_s6, %s1912_s6  }
   0x6   : > { %s1072_s12 = sadd.s32 1, %s1031_s9   ;;  %s24_s13 = sadd.s32 1, %s1027_s8 }
   0x7   : > { %s21_s14 = ssub.s32 %s1031_s9, %s1072_s12  ;;  %p31_p0 = scmp.ne.s32.totalorder %s1027_s8, %s1023_s7 }
   0x8   : > { %p22_p1 = scmp.eq.s32.totalorder %s21_s14, 0  ;;  %p32_p2 = scmp.eq.s32.totalorder %s1031_s9, 0 }
   0x9   : > { %p37_p3 = scmp.ne.s32.totalorder %s1023_s7, %s1019_s6  ;;  %p38_p4 = scmp.eq.s32.totalorder %s1068_s10, 0 }
   0xa   : > { %s1084_s15 = scalar_select %p22_p1, %s1027_s8, %s24_s13  }
   0xb   : > { %p33_p5 = por %p32_p2, %p31_p0  ;;  %p1086_p6 = por %p38_p4, %p37_p3 }
   0xc   : > { %p61_p7 = scmp.eq.s32.totalorder %s1068_s10, 1  ;;  %p67_p8 = scmp.eq.s32.totalorder %s771_s11, 1 }
   0xd   : > { %p773_p9 = scmp.ge.s32.totalorder %s1031_s9, 2  ;;  %p795_p10 = scmp.lt.s32.totalorder %s1031_s9, 2 }
   0xe   : > { %p1093_p11 = por %p61_p7, %p31_p0  ;;  %p1097_p12 = por %p67_p8, %p37_p3 }
   0xf   : > { %s87_s19 = sand.u32 1, %s1027_s8   ;;  %s796_s21 = smul.u32 288, %s1031_s9 }
  0x10   : > { %s779_s20 = smul.u32 288, %s87_s19  ;;  %p1103_p13 = pnand %p795_p10, %p33_p5 }
  0x11   : > { %s97_s25 = scalar_lea.hbm %s1798_s0, %s796_s21  ;;  %p775_p0 = scmp.ge.s32.totalorder %s1031_s9, 1 }
  0x12   : > { %s91_s26 = scalar_lea.vmem [#allocation2], %s779_s20  ;;  %s98_s28 = sshll.u32 %s97_s25, 4  ;;  %s99_s28 = int_to_ptr.hbm [resolvable:$true] %s98_s28 }
  0x13   : > { %s100_s27 = sshll.u32 %s91_s26, 4  ;;  %s88_s29 = scalar_lea.sflag [#allocation3], %s87_s19  ;;  %s101_s27 = int_to_ptr.vmem [resolvable:$true] %s100_s27 }
  0x14   : > { %s935_s30 = sshra.s32 %s99_s28, 4  ;;  %p939_p2 = pneg %p1103_p13  ;;  %s936_s30 = int_to_ptr.hbm [resolvable:$true] %s935_s30 }
  0x15   : > { %s937_s2 = scalar_lea.hbm %s936_s30, 288  ;;  %s942_s5 = scalar_lea.hbm %s1798_s0, 576 }
  0x16   : > { %p938_p1 = scmp.ne.s32.totalorder %s936_s30, %s937_s2  ;;  %p943_p5 = scmp.lt.s32.totalorder %s936_s30, %s1798_s0 }
  0x17   : > { %p944_p7 = scmp.lt.s32.totalorder %s942_s5, %s937_s2 }
  0x18   : > { %p940_p3 = pnand %p939_p2, %p938_p1 }
  0x19   : > { %p945_p8 = por %p944_p7, %p943_p5 }
  0x1a   : > { %p941_p4 = pneg %p940_p3 }
  0x1c   : > { %p946_p10 = pnand %p945_p8, %p941_p4 }
  0x1e   : > { %949 = shalt.err (!%p946_p10)
}
  0x1f   : > { %s1033_s14 = smov 384   ;;  %s1034_s19 = smov 24  }
  0x20   : > { %790 = dma.hbm_to_vmem [thread:$0]  (!%p1103_p13), %s99_s28, 4608, %s101_s27, %s88_s29, %s1033_s14, %s1033_s14, %s1034_s19  }
  0x21   : > { %p108_p1 = scmp.lt.s32.totalorder %s1031_s9, 3 }
  0x23   : > { %p109_p2 = pnand %p775_p0, %p108_p1 }
  0x25   : > { %112 = sbr.rel (%p109_p2) target bundleno = 379 (0x17b), region = 24 }
  0x2a   : > { %s1125_s20 = sand.u32 1, %s1023_s7  }
  0x2b   : > { %s781_s21 = smul.u32 288, %s1125_s20  ;;  %s115_s23 = scalar_lea.sflag [#allocation3], %s1125_s20 }
  0x2d   : > { %s1131_s24 = scalar_lea.vmem [#allocation2], %s781_s21 }
  0x2e   : > { %1010 = dma.done.wait (%p1086_p6), %s115_s23, 4608  }
  0x2f   : > { %1012 = vsyncadd (%p1086_p6), %s115_s23, 4294962688  ;;  %vm177_vm0 = vcmask 556032   ;;  %v1138_v0 = vld [vmem:[%s1131_s24 + $0x60] sm:$0xff]  ;;  %v1141_v1 = vld [vmem:[%s1131_s24 + $0x68] sm:$0xff]  ;;  %s1516_s16 = scalar_lea.vmem [#allocation5], %s781_s21  ;;  %s797_s22 = smul.u32 288, %s1068_s10 }
  0x30   : > { %1834 = vst [vmem:[#allocation8_spill] sm:$0xff] %v1138_v0  ;;  %v1144_v2 = vld [vmem:[%s1131_s24 + $0x70] sm:$0xff]  ;;  %v197_v3 = vmax.f32 %v1138_v0, %v1141_v1  ;;  %v1154_v6 = vld [vmem:[%s1131_s24 + $0x38] sm:$0xff]  ;;  %v1157_v7 = vld [vmem:[%s1131_s24 + $0x40] sm:$0xff]  ;;  %s695_s27 = sshll.u32 %s1516_s16, 4  ;;  %s682_s29 = scalar_lea.sflag [#allocation4], %s1125_s20  ;;  %s696_s27 = int_to_ptr.vmem [resolvable:$true] %s695_s27 }
  0x31   : > { %1835 = vst [vmem:[#allocation9_spill] sm:$0xff] %v1141_v1  ;;  %v198_v4 = vsel %vm177_vm0, %v1144_v2, -inf  ;;  %v1151_v5 = vld [vmem:[%s1131_s24 + $0x30] sm:$0xff]  ;;  %v188_v9 = vsel %vm177_vm0, %v1157_v7, -inf  ;;  %v1164_v10 = vld [vmem:[%s1131_s24] sm:$0xff]  ;;  %v1167_v11 = vld [vmem:[%s1131_s24 + $0x8] sm:$0xff]  ;;  %s694_s26 = scalar_lea.hbm %s1799_s1, %s797_s22 }
  0x32   : > { %1836 = vst [vmem:[#allocation10_spill] sm:$0xff] %v1144_v2  ;;  %v187_v8 = vmax.f32 %v1151_v5, %v1154_v6  ;;  %v1170_v12 = vld [vmem:[%s1131_s24 + $0x10] sm:$0xff]  ;;  %v199_v13 = vmax.f32 %v197_v3, %v198_v4  ;;  %v176_v14 = vmax.f32 %v1164_v10, %v1167_v11  ;;  %v1177_v16 = vld [vmem:[%s1131_s24 + $0x78] sm:$0xff]  ;;  %v1180_v17 = vld [vmem:[%s1131_s24 + $0x80] sm:$0xff]  ;;  %s697_s28 = sshll.u32 %s694_s26, 4  ;;  %s985_s5 = scalar_lea.hbm %s1799_s1, 576  ;;  %s698_s28 = int_to_ptr.hbm [resolvable:$true] %s697_s28 }
  0x33   : > { %v178_v15 = vsel %vm177_vm0, %v1170_v12, -inf  ;;  %v1183_v18 = vld [vmem:[%s1131_s24 + $0x88] sm:$0xff]  ;;  %v1189_v21 = vld [vmem:[%s1131_s24 + $0x50] sm:$0xff]  ;;  %v1192_v22 = vld [vmem:[%s1131_s24 + $0x58] sm:$0xff]  ;;  %v202_v24 = vmax.f32 %v1177_v16, %v1180_v17  ;;  %s979_s30 = sshra.s32 %s698_s28, 4  ;;  %s980_s30 = int_to_ptr.hbm [resolvable:$true] %s979_s30 }
  0x34   : > { %v189_v19 = vmax.f32 %v187_v8, %v188_v9  ;;  %v1186_v20 = vld [vmem:[%s1131_s24 + $0x48] sm:$0xff]  ;;  %200 = vmax.xlane.f32.xlu2 %v199_v13  ;;  %v179_v23 = vmax.f32 %v176_v14, %v178_v15  ;;  %v1197_v25 = vld [vmem:[%s1131_s24 + $0x18] sm:$0xff]  ;;  %v1200_v26 = vld [vmem:[%s1131_s24 + $0x20] sm:$0xff]  ;;  %v203_v28 = vsel %vm177_vm0, %v1183_v18, -inf  ;;  %v193_v30 = vsel %vm177_vm0, %v1192_v22, -inf  ;;  %s981_s2 = scalar_lea.hbm %s980_s30, 288  ;;  %p986_p3 = scmp.lt.s32.totalorder %s980_s30, %s1799_s1 }
  0x35   : > { %v1203_v27 = vld [vmem:[%s1131_s24 + $0x28] sm:$0xff]  ;;  %v192_v29 = vmax.f32 %v1186_v20, %v1189_v21  ;;  %v182_v31 = vmax.f32 %v1197_v25, %v1200_v26  ;;  %v204_v33 = vmax.f32 %v202_v24, %v203_v28  ;;  %v1216_v35 = vld [vmem:[%s1131_s24 + $0xc0] sm:$0xff]  ;;  %v1222_v38 = vld [vmem:[%s1131_s24 + $0xd0] sm:$0xff]  ;;  %p982_p6 = scmp.ne.s32.totalorder %s980_s30, %s981_s2  ;;  %p987_p4 = scmp.lt.s32.totalorder %s985_s5, %s981_s2 }
  0x36   : > { %190 = vmax.xlane.f32.xlu1 %v189_v19  ;;  %180 = vmax.xlane.f32.xlu0 %v179_v23  ;;  %v183_v32 = vsel %vm177_vm0, %v1203_v27, -inf  ;;  %v1219_v36 = vld [vmem:[%s1131_s24 + $0xc8] sm:$0xff]  ;;  %1837 = vst [vmem:[#allocation11_spill] sm:$0xff] %v1222_v38  ;;  %v1228_v40 = vld [vmem:[%s1131_s24 + $0xb0] sm:$0xff]  ;;  %v1234_v42 = vld [vmem:[%s1131_s24 + $0x98] sm:$0xff]  ;;  %v218_v46 = vsel %vm177_vm0, %v1222_v38, -inf }
  0x37   : > { %v194_v34 = vmax.f32 %v192_v29, %v193_v30  ;;  %v184_v37 = vmax.f32 %v182_v31, %v183_v32  ;;  %v1225_v39 = vld [vmem:[%s1131_s24 + $0xa8] sm:$0xff]  ;;  %1839 = vst [vmem:[#allocation13_spill] sm:$0xff] %v1228_v40  ;;  %v1231_v41 = vld [vmem:[%s1131_s24 + $0x90] sm:$0xff]  ;;  %v1237_v43 = vld [vmem:[%s1131_s24 + $0xb8] sm:$0xff]  ;;  %v217_v44 = vmax.f32 %v1216_v35, %v1219_v36  ;;  %p983_p13 = pnand %p982_p6, %p1093_p11  ;;  %p988_p5 = por %p987_p4, %p986_p3 }
  0x38   : > { %1838 = vst [vmem:[#allocation12_spill] sm:$0xff] %v1225_v39  ;;  %v1242_v45 = vld [vmem:[%s1131_s24 + $0xa0] sm:$0xff]  ;;  %v212_v47 = vmax.f32 %v1225_v39, %v1228_v40  ;;  %v207_v48 = vmax.f32 %v1231_v41, %v1234_v42  ;;  %v213_v49 = vsel %vm177_vm0, %v1237_v43, -inf  ;;  %v1255_v53 = vld [vmem:[%s1131_s24 + $0x108] sm:$0xff]  ;;  %v1258_v54 = vld [vmem:[%s1131_s24 + $0x110] sm:$0xff] }
  0x39   : > { %1840 = vst [vmem:[#allocation14_spill] sm:$0xff] %v1231_v41  ;;  %v208_v50 = vsel %vm177_vm0, %v1242_v45, -inf  ;;  %v219_v51 = vmax.f32 %v217_v44, %v218_v46  ;;  %v1261_v56 = vld [vmem:[%s1131_s24 + $0x118] sm:$0xff]  ;;  %v1264_v57 = vld [vmem:[%s1131_s24 + $0xf0] sm:$0xff]  ;;  %v1273_v60 = vld [vmem:[%s1131_s24 + $0xe0] sm:$0xff]  ;;  %v232_v62 = vmax.f32 %v1255_v53, %v1258_v54  ;;  %p984_p0 = pneg %p983_p13 }
  0x3a   : > { %1841 = vst [vmem:[#allocation15_spill] sm:$0xff] %v1234_v42  ;;  %v214_v52 = vmax.f32 %v212_v47, %v213_v49  ;;  %v209_v55 = vmax.f32 %v207_v48, %v208_v50  ;;  %v1267_v58 = vld [vmem:[%s1131_s24 + $0xf8] sm:$0xff]  ;;  %v1276_v61 = vld [vmem:[%s1131_s24 + $0x100] sm:$0xff]  ;;  %v1281_v63 = vld [vmem:[%s1131_s24 + $0xe8] sm:$0xff]  ;;  %v233_v3 = vsel %vm177_vm0, %v1261_v56, -inf }
  0x3b   : > { %1842 = vst [vmem:[#allocation16_spill] sm:$0xff] %v1242_v45  ;;  %v1270_v59 = vld [vmem:[%s1131_s24 + $0xd8] sm:$0xff]  ;;  %v227_v4 = vmax.f32 %v1264_v57, %v1267_v58  ;;  %v228_v9 = vsel %vm177_vm0, %v1276_v61, -inf  ;;  %v223_v13 = vsel %vm177_vm0, %v1281_v63, -inf  ;;  %v234_v14 = vmax.f32 %v232_v62, %v233_v3  ;;  %p989_p7 = pnand %p988_p5, %p984_p0 }
  0x3c   : > { %205 = vmax.xlane.f32.xlu2 %v204_v33  ;;  %1843 = vst [vmem:[#allocation17_spill] sm:$0xff] %v1255_v53  ;;  %v222_v8 = vmax.f32 %v1270_v59, %v1273_v60 }
  0x3d   : > { %1844 = vst [vmem:[#allocation18_spill] sm:$0xff] %v1258_v54  ;;  %v229_v15 = vmax.f32 %v227_v4, %v228_v9 }
  0x3e   : > { %195 = vmax.xlane.f32.xlu1 %v194_v34  ;;  %185 = vmax.xlane.f32.xlu0 %v184_v37  ;;  %1845 = vst [vmem:[#allocation19_spill] sm:$0xff] %v1261_v56  ;;  %v224_v19 = vmax.f32 %v222_v8, %v223_v13 }
  0x3f   : > { %1846 = vst [vmem:[#allocation20_spill] sm:$0xff] %v1270_v59 }
  0x40   : > { %1847 = vst [vmem:[#allocation21_spill] sm:$0xff] %v1273_v60 }
  0x41   : > { %1848 = vst [vmem:[#allocation22_spill] sm:$0xff] %v1281_v63 }
  0x44   : > { %220 = vmax.xlane.f32.xlu2 %v219_v51 }
  0x46   : > { %215 = vmax.xlane.f32.xlu1 %v214_v52  ;;  %210 = vmax.xlane.f32.xlu0 %v209_v55 }
  0x4c   : > { %235 = vmax.xlane.f32.xlu2 %v234_v14 }
  0x4e   : > { %230 = vmax.xlane.f32.xlu1 %v229_v15  ;;  %225 = vmax.xlane.f32.xlu0 %v224_v19 }
  0xa7   : > { %v201_v23 = vpop.xlane.xlu2 %200 }
  0xa8   : > { %v249_v24 = vsub.f32 %v1138_v0, %v201_v23  ;;  %v250_v28 = vsub.f32 %v1141_v1, %v201_v23  ;;  %v251_v29 = vsub.f32 %v1144_v2, %v201_v23 }
  0xa9   : > { %v191_v30 = vpop.xlane.xlu1 %190  ;;  %v181_v34 = vpop.xlane.xlu0 %180 }
  0xaa   : > { %v243_v31 = vsub.f32 %v1151_v5, %v191_v30  ;;  %v244_v32 = vsub.f32 %v1154_v6, %v191_v30  ;;  %v245_v33 = vsub.f32 %v1157_v7, %v191_v30  ;;  %v297_v37 = vmul.f32 1.442695, %v249_v24 }
  0xab   : > { %v299_v44 = vmul.f32 1.442695, %v250_v28  ;;  %v301_v46 = vmul.f32 1.442695, %v251_v29  ;;  %v237_v47 = vsub.f32 %v1164_v10, %v181_v34  ;;  %v238_v49 = vsub.f32 %v1167_v11, %v181_v34 }
  0xac   : > { %v285_v48 = vmul.f32 1.442695, %v243_v31  ;;  %835 = vpow2.f32 %v297_v37  ;;  %v287_v50 = vmul.f32 1.442695, %v244_v32  ;;  %v239_v51 = vsub.f32 %v1170_v12, %v181_v34 }
  0xad   : > { %837 = vpow2.f32 %v299_v44  ;;  %v289_v52 = vmul.f32 1.442695, %v245_v33  ;;  %v273_v55 = vmul.f32 1.442695, %v237_v47  ;;  %v275_v62 = vmul.f32 1.442695, %v238_v49 }
  0xae   : > { %839 = vpow2.f32 %v301_v46  ;;  %v277_v3 = vmul.f32 1.442695, %v239_v51 }
  0xaf   : > { %841 = vpow2.f32 %v285_v48  ;;  %v206_v4 = vpop.xlane.xlu2 %205 }
  0xb0   : > { %843 = vpow2.f32 %v287_v50  ;;  %v252_v8 = vsub.f32 %v1177_v16, %v206_v4  ;;  %v253_v9 = vsub.f32 %v1180_v17, %v206_v4  ;;  %v254_v13 = vsub.f32 %v1183_v18, %v206_v4 }
  0xb1   : > { %v196_v14 = vpop.xlane.xlu1 %195  ;;  %845 = vpow2.f32 %v289_v52  ;;  %v186_v23 = vpop.xlane.xlu0 %185 }
  0xb2   : > { %v246_v15 = vsub.f32 %v1186_v20, %v196_v14  ;;  %v247_v19 = vsub.f32 %v1189_v21, %v196_v14  ;;  %v1307_v24 = vpop.eup %835  ;;  %847 = vpow2.f32 %v273_v55  ;;  %v303_v28 = vmul.f32 1.442695, %v252_v8 }
  0xb3   : > { %v305_v29 = vmul.f32 1.442695, %v253_v9  ;;  %v248_v30 = vsub.f32 %v1192_v22, %v196_v14  ;;  %v1310_v31 = vpop.eup %837  ;;  %849 = vpow2.f32 %v275_v62  ;;  %v307_v32 = vmul.f32 1.442695, %v254_v13 }
  0xb4   : > { %v291_v33 = vmul.f32 1.442695, %v246_v15  ;;  %v1312_v34 = vpop.eup %839  ;;  %851 = vpow2.f32 %v277_v3  ;;  %v240_v37 = vsub.f32 %v1197_v25, %v186_v23  ;;  %v241_v44 = vsub.f32 %v1200_v26, %v186_v23 }
  0xb5   : > { %v242_v46 = vsub.f32 %v1203_v27, %v186_v23  ;;  %v1317_v47 = vpop.eup %841  ;;  %853 = vpow2.f32 %v303_v28  ;;  %v293_v48 = vmul.f32 1.442695, %v247_v19  ;;  %v295_v50 = vmul.f32 1.442695, %v248_v30 }
  0xb6   : > { %v1319_v49 = vpop.eup %843  ;;  %855 = vpow2.f32 %v305_v29  ;;  %v279_v51 = vmul.f32 1.442695, %v240_v37  ;;  %v281_v55 = vmul.f32 1.442695, %v241_v44 }
  0xb7   : > { %v1321_v52 = vpop.eup %845  ;;  %857 = vpow2.f32 %v307_v32  ;;  %v283_v62 = vmul.f32 1.442695, %v242_v46  ;;  %v221_v3 = vpop.xlane.xlu2 %220  ;;  %v355_v4 = vadd.f32 %v1319_v49, %v1317_v47 }
  0xb8   : > { %v1325_v8 = vpop.eup %847  ;;  %859 = vpow2.f32 %v291_v33  ;;  %v261_v9 = vsub.f32 %v1216_v35, %v221_v3  ;;  %v262_v13 = vsub.f32 %v1219_v36, %v221_v3  ;;  %v263_v14 = vsub.f32 %v1222_v38, %v221_v3 }
  0xb9   : > { %v216_v15 = vpop.xlane.xlu1 %215  ;;  %v1330_v19 = vpop.eup %849  ;;  %861 = vpow2.f32 %v293_v48  ;;  %v356_v23 = vsel %vm177_vm0, %v1321_v52, 0.0 }
  0xba   : > { %v211_v28 = vpop.xlane.xlu0 %210  ;;  %v258_v29 = vsub.f32 %v1225_v39, %v216_v15  ;;  %v259_v30 = vsub.f32 %v1228_v40, %v216_v15  ;;  %v1336_v32 = vpop.eup %851  ;;  %863 = vpow2.f32 %v295_v50  ;;  %v321_v33 = vmul.f32 1.442695, %v261_v9 }
  0xbb   : > { %v323_v37 = vmul.f32 1.442695, %v262_v13  ;;  %v325_v44 = vmul.f32 1.442695, %v263_v14  ;;  %v1338_v46 = vpop.eup %853  ;;  %865 = vpow2.f32 %v279_v51  ;;  %v357_v3 = vadd.f32 %v356_v23, %v355_v4 }
  0xbc   : > { %v345_v48 = vadd.f32 %v1330_v19, %v1325_v8  ;;  %v346_v2 = vsel %vm177_vm0, %v1336_v32, 0.0  ;;  %v1344_v1 = vpop.eup %855  ;;  %867 = vpow2.f32 %v281_v55  ;;  %v255_v40 = vsub.f32 %v1231_v41, %v211_v28 }
  0xbd   : > { %v256_v50 = vsub.f32 %v1234_v42, %v211_v28  ;;  %v257_v9 = vsub.f32 %v1242_v45, %v211_v28  ;;  %v1349_v13 = vpop.eup %857  ;;  %869 = vpow2.f32 %v283_v62  ;;  %358 = vadd.xlane.f32.xlu2 %v357_v3  ;;  %v260_v4 = vsub.f32 %v1237_v43, %v216_v15 }
  0xbe   : > { %v347_v51 = vadd.f32 %v346_v2, %v345_v48  ;;  %v315_v14 = vmul.f32 1.442695, %v258_v29  ;;  %v1352_v23 = vpop.eup %859  ;;  %871 = vpow2.f32 %v321_v33  ;;  %v309_v39 = vmul.f32 1.442695, %v255_v40 }
  0xbf   : > { %v311_v0 = vmul.f32 1.442695, %v256_v50  ;;  %v313_v55 = vmul.f32 1.442695, %v257_v9  ;;  %v1354_v38 = vpop.eup %861  ;;  %873 = vpow2.f32 %v323_v37  ;;  %v317_v42 = vmul.f32 1.442695, %v259_v30  ;;  %v236_v45 = vpop.xlane.xlu2 %235 }
  0xc0   : > { %348 = vadd.xlane.f32.xlu0 %v347_v51  ;;  %v319_v28 = vmul.f32 1.442695, %v260_v4  ;;  %v370_v62 = vadd.f32 %v1344_v1, %v1338_v46  ;;  %v1358_v2 = vpop.eup %863  ;;  %875 = vpow2.f32 %v325_v44  ;;  %v270_v43 = vsub.f32 %v1255_v53, %v236_v45 }
  0xc1   : > { %v271_v15 = vsub.f32 %v1258_v54, %v236_v45  ;;  %v272_v40 = vsub.f32 %v1261_v56, %v236_v45  ;;  %v1363_v29 = vpop.eup %865  ;;  %877 = vpow2.f32 %v309_v39  ;;  %v371_v30 = vsel %vm177_vm0, %v1349_v13, 0.0  ;;  %v231_v45 = vpop.xlane.xlu1 %230 }
  0xc2   : > { %v360_v33 = vadd.f32 %v1354_v38, %v1352_v23  ;;  %v361_v37 = vsel %vm177_vm0, %v1358_v2, 0.0  ;;  %v226_v3 = vpop.xlane.xlu0 %225  ;;  %v1371_v44 = vpop.eup %867  ;;  %879 = vpow2.f32 %v311_v0  ;;  %v339_v48 = vmul.f32 1.442695, %v270_v43 }
  0xc3   : > { %v341_v50 = vmul.f32 1.442695, %v271_v15  ;;  %v343_v9 = vmul.f32 1.442695, %v272_v40  ;;  %v1373_v51 = vpop.eup %869  ;;  %881 = vpow2.f32 %v313_v55  ;;  %v372_v39 = vadd.f32 %v371_v30, %v370_v62 }
  0xc4   : > { %v362_v4 = vadd.f32 %v361_v37, %v360_v33  ;;  %v350_v56 = vadd.f32 %v1371_v44, %v1363_v29  ;;  %v1377_v54 = vpop.eup %871  ;;  %883 = vpow2.f32 %v315_v14  ;;  %v351_v53 = vsel %vm177_vm0, %v1373_v51, 0.0 }
  0xc5   : > { %v264_v0 = vsub.f32 %v1270_v59, %v226_v3  ;;  %v265_v43 = vsub.f32 %v1273_v60, %v226_v3  ;;  %v1383_v15 = vpop.eup %873  ;;  %885 = vpow2.f32 %v317_v42  ;;  %373 = vadd.xlane.f32.xlu2 %v372_v39  ;;  %v266_v62 = vsub.f32 %v1281_v63, %v226_v3 }
  0xc6   : > { %v352_v55 = vadd.f32 %v351_v53, %v350_v56  ;;  %v267_v40 = vsub.f32 %v1264_v57, %v231_v45  ;;  %v1387_v30 = vpop.eup %875  ;;  %887 = vpow2.f32 %v319_v28  ;;  %v268_v33 = vsub.f32 %v1267_v58, %v231_v45 }
  0xc7   : > { %v327_v14 = vmul.f32 1.442695, %v264_v0  ;;  %v1390_v37 = vpop.eup %877  ;;  %889 = vpow2.f32 %v339_v48  ;;  %v329_v60 = vmul.f32 1.442695, %v265_v43  ;;  %v269_v42 = vsub.f32 %v1276_v61, %v231_v45 }
  0xc8   : > { %1849 = vst [vmem:[#allocation23_spill] sm:$0xff] %v1390_v37  ;;  %363 = vadd.xlane.f32.xlu0 %v362_v4  ;;  %353 = vadd.xlane.f32.xlu1 %v352_v55  ;;  %v365_v53 = vadd.f32 %v1310_v31, %v1307_v24  ;;  %v1395_v56 = vpop.eup %879  ;;  %891 = vpow2.f32 %v341_v50  ;;  %v331_v57 = vmul.f32 1.442695, %v266_v62  ;;  %v385_v28 = vadd.f32 %v1383_v15, %v1377_v54 }
  0xc9   : > { %1850 = vst [vmem:[#allocation24_spill] sm:$0xff] %v1395_v56  ;;  %v386_v58 = vsel %vm177_vm0, %v1387_v30, 0.0  ;;  %v1401_v3 = vpop.eup %881  ;;  %893 = vpow2.f32 %v343_v9  ;;  %v333_v48 = vmul.f32 1.442695, %v267_v40  ;;  %v366_v61 = vsel %vm177_vm0, %v1312_v34, 0.0 }
  0xca   : > { %1851 = vst [vmem:[#allocation25_spill] sm:$0xff] %v1401_v3  ;;  %v375_v45 = vadd.f32 %v1395_v56, %v1390_v37  ;;  %v1407_v39 = vpop.eup %883  ;;  %895 = vpow2.f32 %v327_v14  ;;  %v335_v50 = vmul.f32 1.442695, %v268_v33  ;;  %v387_v4 = vadd.f32 %v386_v58, %v385_v28 }
  0xcb   : > { %1852 = vst [vmem:[#allocation26_spill] sm:$0xff] %v1407_v39  ;;  %v376_v0 = vsel %vm177_vm0, %v1401_v3, 0.0  ;;  %v1411_v43 = vpop.eup %885  ;;  %897 = vpow2.f32 %v329_v60  ;;  %v337_v55 = vmul.f32 1.442695, %v269_v42  ;;  %v367_v63 = vadd.f32 %v366_v61, %v365_v53 }
  0xcc   : > { %1853 = vst [vmem:[#allocation27_spill] sm:$0xff] %v1411_v43  ;;  %v377_v9 = vadd.f32 %v376_v0, %v375_v45  ;;  %v1413_v62 = vpop.eup %887  ;;  %899 = vpow2.f32 %v331_v57  ;;  %v380_v33 = vadd.f32 %v1411_v43, %v1407_v39 }
  0xcd   : > { %1854 = vst [vmem:[#allocation28_spill] sm:$0xff] %v1413_v62  ;;  %v1415_v40 = vpop.eup %889  ;;  %901 = vpow2.f32 %v333_v48  ;;  %388 = vadd.xlane.f32.xlu2 %v387_v4  ;;  %v381_v53 = vsel %vm177_vm0, %v1413_v62, 0.0 }
  0xce   : > { %1855 = vst [vmem:[#allocation29_spill] sm:$0xff] %v1415_v40  ;;  %v1417_v59 = vpop.eup %891  ;;  %903 = vpow2.f32 %v335_v50  ;;  %v382_v45 = vadd.f32 %v381_v53, %v380_v33 }
  0xcf   : > { %1856 = vst [vmem:[#allocation30_spill] sm:$0xff] %v1417_v59  ;;  %v1419_v14 = vpop.eup %893  ;;  %905 = vpow2.f32 %v337_v55  ;;  %v400_v60 = vadd.f32 %v1417_v59, %v1415_v40 }
  0xd0   : > { %1857 = vst [vmem:[#allocation31_spill] sm:$0xff] %v1419_v14  ;;  %368 = vadd.xlane.f32.xlu1 %v367_v63  ;;  %378 = vadd.xlane.f32.xlu0 %v377_v9  ;;  %v1425_v42 = vpop.eup %895  ;;  %v401_v57 = vsel %vm177_vm0, %v1419_v14, 0.0 }
  0xd1   : > { %1858 = vst [vmem:[#allocation32_spill] sm:$0xff] %v1425_v42  ;;  %v1431_v28 = vpop.eup %897  ;;  %v402_v58 = vadd.f32 %v401_v57, %v400_v60 }
  0xd2   : > { %1859 = vst [vmem:[#allocation33_spill] sm:$0xff] %v1431_v28  ;;  %v1433_v48 = vpop.eup %899  ;;  %v390_v63 = vadd.f32 %v1431_v28, %v1425_v42 }
  0xd3   : > { %1860 = vst [vmem:[#allocation34_spill] sm:$0xff] %v1433_v48  ;;  %v1437_v61 = vpop.eup %901  ;;  %v391_v50 = vsel %vm177_vm0, %v1433_v48, 0.0 }
  0xd4   : > { %1861 = vst [vmem:[#allocation35_spill] sm:$0xff] %v1437_v61  ;;  %v1441_v4 = vpop.eup %903  ;;  %v392_v0 = vadd.f32 %v391_v50, %v390_v63 }
  0xd5   : > { %1862 = vst [vmem:[#allocation36_spill] sm:$0xff] %v1441_v4  ;;  %v1443_v55 = vpop.eup %905  ;;  %403 = vadd.xlane.f32.xlu2 %v402_v58  ;;  %v395_v9 = vadd.f32 %v1441_v4, %v1437_v61 }
  0xd6   : > { %1863 = vst [vmem:[#allocation37_spill] sm:$0xff] %v1443_v55  ;;  %v396_v60 = vsel %vm177_vm0, %v1443_v55, 0.0 }
  0xd7   : > { %v397_v57 = vadd.f32 %v396_v60, %v395_v9 }
  0xd8   : > { %383 = vadd.xlane.f32.xlu1 %v382_v45  ;;  %393 = vadd.xlane.f32.xlu0 %v392_v0 }
  0xe0   : > { %398 = vadd.xlane.f32.xlu1 %v397_v57 }
 0x130   : > { %v359_v33 = vpop.xlane.xlu2 %358 }
 0x131   : > { %907 = vrcp.f32 %v359_v33  ;;  %v442_v28 = vand.u32 2147483647, %v359_v33  ;;  %v444_v50 = vand.u32 2147483648, %v359_v33  ;;  %vm438_vm1 = vweird.f32 %v359_v33 }
 0x133   : > { %v349_v53 = vpop.xlane.xlu0 %348  ;;  %vm1456_vm2 = vcmp.eq.f32.partialorder %v442_v28, 8.507059e+37  ;;  %v445_v43 = vor.u32 1.1754944e-38, %v444_v50 }
 0x134   : > { %909 = vrcp.f32 %v349_v53  ;;  %v414_v4 = vand.u32 2147483647, %v349_v53  ;;  %v416_v57 = vand.u32 2147483648, %v349_v53  ;;  %vm410_vm4 = vweird.f32 %v349_v53 }
 0x136   : > { %vm1465_vm6 = vcmp.eq.f32.partialorder %v414_v4, 8.507059e+37  ;;  %v417_v50 = vor.u32 1.1754944e-38, %v416_v57 }
 0x137   : > { %v908_v48 = vpop.eup %907 }
 0x138   : > { %v434_v63 = vmul.f32 %v908_v48, %v359_v33  ;;  %v1449_v42 = vpop.xlane.xlu2 %373  ;;  %vm439_vm3 = vweird.f32 %v908_v48 }
 0x139   : > { %911 = vrcp.f32 %v1449_v42  ;;  %v486_v61 = vand.u32 2147483648, %v1449_v42  ;;  %v484_v39 = vand.u32 2147483647, %v1449_v42  ;;  %vm440_vm7 = vmor %vm438_vm1, %vm439_vm3  ;;  %vm480_vm8 = vweird.f32 %v1449_v42 }
 0x13a   : > { %v910_v58 = vpop.eup %909  ;;  %v435_v45 = vsub.f32 1.0, %v434_v63 }
 0x13b   : > { %v406_v0 = vmul.f32 %v910_v58, %v349_v53  ;;  %v1452_v55 = vpop.xlane.xlu1 %353  ;;  %v1454_v9 = vpop.xlane.xlu0 %363  ;;  %vm411_vm5 = vweird.f32 %v910_v58  ;;  %vm1485_vm10 = vcmp.eq.f32.partialorder %v484_v39, 8.507059e+37 }
 0x13c   : > { %913 = vrcp.f32 %v1452_v55  ;;  %v436_v62 = vmul.f32 %v908_v48, %v435_v45  ;;  %v430_v14 = vand.u32 2147483648, %v1452_v55  ;;  %v487_v45 = vor.u32 1.1754944e-38, %v486_v61  ;;  %vm412_vm9 = vmor %vm410_vm4, %vm411_vm5 }
 0x13d   : > { %v407_v63 = vsub.f32 1.0, %v406_v0  ;;  %915 = vrcp.f32 %v1454_v9  ;;  %v428_v0 = vand.u32 2147483647, %v1452_v55  ;;  %v456_v4 = vand.u32 2147483647, %v1454_v9 }
 0x13e   : > { %v437_v28 = vadd.f32 %v908_v48, %v436_v62  ;;  %vm424_vm11 = vweird.f32 %v1452_v55  ;;  %vm452_vm12 = vweird.f32 %v1454_v9 }
 0x13f   : > { %v408_v59 = vmul.f32 %v910_v58, %v407_v63  ;;  %v1469_v41 = vpop.eup %911  ;;  %vm1503_vm14 = vcmp.eq.f32.partialorder %v428_v0, 8.507059e+37  ;;  %vm1523_vm1 = vcmp.eq.f32.partialorder %v456_v4, 8.507059e+37 }
 0x140   : > { %v441_v3 = vsel %vm440_vm7, %v908_v48, %v437_v28  ;;  %v476_v62 = vmul.f32 %v1469_v41, %v1449_v42  ;;  %v1477_v63 = vpop.xlane.xlu2 %388  ;;  %v458_v48 = vand.u32 2147483648, %v1454_v9  ;;  %vm481_vm13 = vweird.f32 %v1469_v41 }
 0x141   : > { %v409_v56 = vadd.f32 %v910_v58, %v408_v59  ;;  %v446_v33 = vsel %vm1456_vm2, %v445_v43, %v441_v3  ;;  %v431_v59 = vor.u32 1.1754944e-38, %v430_v14  ;;  %917 = vrcp.f32 %v1477_v63  ;;  %vm482_vm2 = vmor %vm480_vm8, %vm481_vm13 }
 0x142   : > { %v1479_v37 = vpop.eup %913  ;;  %v579_v57 = vmul.f32 %v1317_v47, %v446_v33  ;;  %v580_v28 = vmul.f32 %v1319_v49, %v446_v33  ;;  %v581_v3 = vmul.f32 %v1321_v52, %v446_v33  ;;  %v477_v14 = vsub.f32 1.0, %v476_v62 }
 0x143   : > { %v413_v43 = vsel %vm412_vm9, %v910_v58, %v409_v56  ;;  %v1496_v39 = vpop.eup %915  ;;  %v420_v60 = vmul.f32 %v1479_v37, %v1452_v55  ;;  %vm425_vm15 = vweird.f32 %v1479_v37  ;;  %vm522_vm3 = vweird.f32 %v1477_v63 }
 0x144   : > { %v418_v53 = vsel %vm1465_vm6, %v417_v50, %v413_v43  ;;  %v615_v49 = vmul.f32 %v579_v57, %v1151_v5  ;;  %v616_v52 = vmul.f32 %v580_v28, %v1154_v6  ;;  %v617_v56 = vmul.f32 %v581_v3, %v1157_v7  ;;  %vm426_vm5 = vmor %vm424_vm11, %vm425_vm15 }
 0x145   : > { %v573_v58 = vmul.f32 %v1325_v8, %v418_v53  ;;  %v574_v40 = vmul.f32 %v1330_v19, %v418_v53  ;;  %v575_v50 = vmul.f32 %v1336_v32, %v418_v53  ;;  %v478_v62 = vmul.f32 %v1469_v41, %v477_v14  ;;  %v1527_v19 = vpop.xlane.xlu1 %368 }
 0x146   : > { %v421_v33 = vsub.f32 1.0, %v420_v60  ;;  %651 = vst [vmem:[%s1516_s16 + $0x30] sm:$0xff] %v615_v49  ;;  %v448_v6 = vmul.f32 %v1496_v39, %v1454_v9  ;;  %v459_v8 = vor.u32 1.1754944e-38, %v458_v48  ;;  %vm453_vm4 = vweird.f32 %v1496_v39 }
 0x147   : > { %v609_v5 = vmul.f32 %v573_v58, %v1164_v10  ;;  %v1529_v32 = vpop.eup %917  ;;  %652 = vst [vmem:[%s1516_s16 + $0x38] sm:$0xff] %v616_v52  ;;  %v610_v0 = vmul.f32 %v574_v40, %v1167_v11  ;;  %v611_v10 = vmul.f32 %v575_v50, %v1170_v12  ;;  %v479_v57 = vadd.f32 %v1469_v41, %v478_v62  ;;  %vm454_vm7 = vmor %vm452_vm12, %vm453_vm4 }
 0x148   : > { %v422_v28 = vmul.f32 %v1479_v37, %v421_v33  ;;  %653 = vst.msk [vmem:[%s1516_s16 + $0x40] sm:$0xff] %vm177_vm0, %v617_v56  ;;  %v449_v4 = vsub.f32 1.0, %v448_v6  ;;  %v518_v48 = vmul.f32 %v1529_v32, %v1477_v63  ;;  %v526_v11 = vand.u32 2147483647, %v1477_v63  ;;  %v1571_v56 = vpop.xlane.xlu0 %378  ;;  %v1616_v6 = vpop.xlane.xlu2 %403 }
 0x149   : > { %645 = vst [vmem:[%s1516_s16] sm:$0xff] %v609_v5  ;;  %v483_v12 = vsel %vm482_vm2, %v1469_v41, %v479_v57  ;;  %919 = vrcp.f32 %v1527_v19  ;;  %v528_v41 = vand.u32 2147483648, %v1477_v63  ;;  %vm523_vm6 = vweird.f32 %v1529_v32 }
 0x14a   : > { %v423_v3 = vadd.f32 %v1479_v37, %v422_v28  ;;  %646 = vst [vmem:[%s1516_s16 + $0x8] sm:$0xff] %v610_v0  ;;  %v488_v42 = vsel %vm1485_vm10, %v487_v45, %v483_v12  ;;  %v450_v43 = vmul.f32 %v1496_v39, %v449_v4  ;;  %v519_v53 = vsub.f32 1.0, %v518_v48  ;;  %vm524_vm8 = vmor %vm522_vm3, %vm523_vm6 }
 0x14b   : > { %647 = vst.msk [vmem:[%s1516_s16 + $0x10] sm:$0xff] %vm177_vm0, %v611_v10  ;;  %v588_v14 = vmul.f32 %v1338_v46, %v488_v42  ;;  %v589_v60 = vmul.f32 %v1344_v1, %v488_v42  ;;  %v590_v49 = vmul.f32 %v1349_v13, %v488_v42  ;;  %vm527_vm9 = vcmp.eq.f32.partialorder %v526_v11, 8.507059e+37 }
 0x14c   : > { %v427_v45 = vsel %vm426_vm5, %v1479_v37, %v423_v3  ;;  %v451_v61 = vadd.f32 %v1496_v39, %v450_v43  ;;  %v520_v52 = vmul.f32 %v1529_v32, %v519_v53  ;;  %921 = vrcp.f32 %v1571_v56  ;;  %v1894_v3 = vld [vmem:[#allocation31_spill] sm:$0xff] }
 0x14d   : > { %v432_v55 = vsel %vm1503_vm14, %v431_v59, %v427_v45  ;;  %v624_v46 = vmul.f32 %v588_v14, %v1177_v16  ;;  %v625_v1 = vmul.f32 %v589_v60, %v1180_v17  ;;  %v626_v13 = vmul.f32 %v590_v49, %v1183_v18  ;;  %v1609_v63 = vpop.xlane.xlu1 %383 }
 0x14e   : > { %v576_v37 = vmul.f32 %v1363_v29, %v432_v55  ;;  %v577_v59 = vmul.f32 %v1371_v44, %v432_v55  ;;  %v578_v47 = vmul.f32 %v1373_v51, %v432_v55  ;;  %v455_v58 = vsel %vm454_vm7, %v1496_v39, %v451_v61 }
 0x14f   : > { %v521_v16 = vadd.f32 %v1529_v32, %v520_v52  ;;  %v1585_v40 = vpop.eup %919  ;;  %660 = vst [vmem:[%s1516_s16 + $0x78] sm:$0xff] %v624_v46  ;;  %v460_v18 = vsel %vm1523_vm1, %v459_v8, %v455_v58  ;;  %v529_v29 = vor.u32 1.1754944e-38, %v528_v41  ;;  %923 = vrcp.f32 %v1616_v6  ;;  %v1899_v46 = vld [vmem:[#allocation18_spill] sm:$0xff] }
 0x150   : > { %v612_v17 = vmul.f32 %v576_v37, %v1197_v25  ;;  %661 = vst [vmem:[%s1516_s16 + $0x80] sm:$0xff] %v625_v1  ;;  %v613_v44 = vmul.f32 %v577_v59, %v1200_v26  ;;  %v614_v51 = vmul.f32 %v578_v47, %v1203_v27  ;;  %v582_v9 = vmul.f32 %v1352_v23, %v460_v18  ;;  %v1632_v0 = vpop.xlane.xlu0 %393  ;;  %v1880_v1 = vld [vmem:[#allocation9_spill] sm:$0xff]  ;;  %v1881_v37 = vld [vmem:[#allocation10_spill] sm:$0xff] }
 0x151   : > { %v583_v39 = vmul.f32 %v1354_v38, %v460_v18  ;;  %662 = vst.msk [vmem:[%s1516_s16 + $0x88] sm:$0xff] %vm177_vm0, %v626_v13  ;;  %v584_v25 = vmul.f32 %v1358_v2, %v460_v18  ;;  %v525_v50 = vsel %vm524_vm8, %v1529_v32, %v521_v16  ;;  %v462_v26 = vmul.f32 %v1585_v40, %v1527_v19 }
 0x152   : > { %648 = vst [vmem:[%s1516_s16 + $0x18] sm:$0xff] %v612_v17  ;;  %v618_v27 = vmul.f32 %v582_v9, %v1186_v20  ;;  %v530_v23 = vsel %vm527_vm9, %v529_v29, %v525_v50  ;;  %vm467_vm10 = vweird.f32 %v1585_v40  ;;  %v500_v32 = vand.u32 2147483648, %v1571_v56  ;;  %v922_v4 = vpop.eup %921 }
 0x153   : > { %v619_v38 = vmul.f32 %v583_v39, %v1189_v21  ;;  %649 = vst [vmem:[%s1516_s16 + $0x20] sm:$0xff] %v613_v44  ;;  %v620_v62 = vmul.f32 %v584_v25, %v1192_v22  ;;  %v597_v2 = vmul.f32 %v1377_v54, %v530_v23  ;;  %v598_v33 = vmul.f32 %v1383_v15, %v530_v23 }
 0x154   : > { %v599_v5 = vmul.f32 %v1387_v30, %v530_v23  ;;  %650 = vst.msk [vmem:[%s1516_s16 + $0x28] sm:$0xff] %vm177_vm0, %v614_v51  ;;  %v463_v20 = vsub.f32 1.0, %v462_v26  ;;  %v470_v21 = vand.u32 2147483647, %v1527_v19  ;;  %v472_v15 = vand.u32 2147483648, %v1527_v19  ;;  %v1874_v30 = vld [vmem:[#allocation11_spill] sm:$0xff] }
 0x155   : > { %654 = vst [vmem:[%s1516_s16 + $0x48] sm:$0xff] %v618_v27  ;;  %v633_v22 = vmul.f32 %v597_v2, %v1216_v35  ;;  %v634_v54 = vmul.f32 %v598_v33, %v1219_v36  ;;  %v498_v35 = vand.u32 2147483647, %v1571_v56  ;;  %925 = vrcp.f32 %v1609_v63  ;;  %v924_v53 = vpop.eup %923  ;;  %v1663_v45 = vpop.xlane.xlu1 %398 }
 0x156   : > { %655 = vst [vmem:[%s1516_s16 + $0x50] sm:$0xff] %v619_v38  ;;  %v635_v7 = vmul.f32 %v599_v5, %v1874_v30  ;;  %v464_v8 = vmul.f32 %v1585_v40, %v463_v20  ;;  %vm466_vm11 = vweird.f32 %v1527_v19  ;;  %v570_v10 = vand.u32 2147483648, %v1616_v6  ;;  %v1886_v20 = vld [vmem:[#allocation23_spill] sm:$0xff] }
 0x157   : > { %656 = vst.msk [vmem:[%s1516_s16 + $0x58] sm:$0xff] %vm177_vm0, %v620_v62  ;;  %vm468_vm12 = vmor %vm466_vm11, %vm467_vm10  ;;  %vm471_vm13 = vcmp.eq.f32.partialorder %v470_v21, 8.507059e+37  ;;  %v473_v57 = vor.u32 1.1754944e-38, %v472_v15  ;;  %v568_v28 = vand.u32 2147483647, %v1616_v6  ;;  %927 = vrcp.f32 %v1632_v0  ;;  %v1888_v15 = vld [vmem:[#allocation25_spill] sm:$0xff] }
 0x158   : > { %669 = vst [vmem:[%s1516_s16 + $0xc0] sm:$0xff] %v633_v22  ;;  %v465_v36 = vadd.f32 %v1585_v40, %v464_v8  ;;  %vm494_vm14 = vweird.f32 %v1571_v56  ;;  %v501_v19 = vor.u32 1.1754944e-38, %v500_v32  ;;  %vm564_vm15 = vweird.f32 %v1616_v6  ;;  %v1887_v22 = vld [vmem:[#allocation24_spill] sm:$0xff] }
 0x159   : > { %670 = vst [vmem:[%s1516_s16 + $0xc8] sm:$0xff] %v634_v54  ;;  %v490_v12 = vmul.f32 %v922_v4, %v1571_v56  ;;  %vm1653_vm1 = vcmp.eq.f32.partialorder %v498_v35, 8.507059e+37  ;;  %v512_v42 = vand.u32 2147483647, %v1609_v63  ;;  %v514_v43 = vand.u32 2147483648, %v1609_v63 }
 0x15a   : > { %671 = vst.msk [vmem:[%s1516_s16 + $0xd0] sm:$0xff] %vm177_vm0, %v635_v7  ;;  %v469_v48 = vsel %vm468_vm12, %v1585_v40, %v465_v36  ;;  %v571_v49 = vor.u32 1.1754944e-38, %v570_v10  ;;  %vm508_vm2 = vweird.f32 %v1609_v63  ;;  %vm495_vm3 = vweird.f32 %v922_v4  ;;  %v1889_v36 = vld [vmem:[#allocation14_spill] sm:$0xff] }
 0x15b   : > { %v474_v11 = vsel %vm471_vm13, %v473_v57, %v469_v48  ;;  %v926_v55 = vpop.eup %925  ;;  %v491_v61 = vsub.f32 1.0, %v490_v12  ;;  %v560_v52 = vmul.f32 %v924_v53, %v1616_v6  ;;  %vm1666_vm4 = vcmp.eq.f32.partialorder %v568_v28, 8.507059e+37  ;;  %vm496_vm8 = vmor %vm494_vm14, %vm495_vm3  ;;  %v1890_v57 = vld [vmem:[#allocation15_spill] sm:$0xff] }
 0x15c   : > { %v585_v41 = vmul.f32 %v1307_v24, %v474_v11  ;;  %v586_v14 = vmul.f32 %v1310_v31, %v474_v11  ;;  %v587_v60 = vmul.f32 %v1312_v34, %v474_v11  ;;  %v540_v24 = vand.u32 2147483647, %v1632_v0  ;;  %v1879_v31 = vld [vmem:[#allocation8_spill] sm:$0xff] }
 0x15d   : > { %v504_v47 = vmul.f32 %v926_v55, %v1609_v63  ;;  %v928_v58 = vpop.eup %927  ;;  %v492_v16 = vmul.f32 %v922_v4, %v491_v61  ;;  %v561_v40 = vsub.f32 1.0, %v560_v52  ;;  %v542_v17 = vand.u32 2147483648, %v1632_v0  ;;  %v1893_v63 = vld [vmem:[#allocation30_spill] sm:$0xff]  ;;  %v1898_v52 = vld [vmem:[#allocation28_spill] sm:$0xff] }
 0x15e   : > { %v621_v34 = vmul.f32 %v585_v41, %v1879_v31  ;;  %v622_v13 = vmul.f32 %v586_v14, %v1880_v1  ;;  %v623_v59 = vmul.f32 %v587_v60, %v1881_v37  ;;  %929 = vrcp.f32 %v1663_v45  ;;  %v1895_v41 = vld [vmem:[#allocation17_spill] sm:$0xff]  ;;  %v1896_v60 = vld [vmem:[#allocation26_spill] sm:$0xff]  ;;  %v1900_v31 = vld [vmem:[#allocation19_spill] sm:$0xff] }
 0x15f   : > { %v505_v18 = vsub.f32 1.0, %v504_v47  ;;  %vm1678_vm5 = vcmp.eq.f32.partialorder %v512_v42, 8.507059e+37  ;;  %v532_v44 = vmul.f32 %v928_v58, %v1632_v0  ;;  %vm536_vm6 = vweird.f32 %v1632_v0  ;;  %v1901_v37 = vld [vmem:[#allocation12_spill] sm:$0xff]  ;;  %v1902_v47 = vld [vmem:[#allocation13_spill] sm:$0xff] }
 0x160   : > { %657 = vst [vmem:[%s1516_s16 + $0x60] sm:$0xff] %v621_v34  ;;  %v493_v51 = vadd.f32 %v922_v4, %v492_v16  ;;  %v562_v9 = vmul.f32 %v924_v53, %v561_v40  ;;  %vm565_vm7 = vweird.f32 %v924_v53  ;;  %v515_v39 = vor.u32 1.1754944e-38, %v514_v43  ;;  %v1903_v16 = vld [vmem:[#allocation32_spill] sm:$0xff] }
 0x161   : > { %658 = vst [vmem:[%s1516_s16 + $0x68] sm:$0xff] %v622_v13  ;;  %v506_v25 = vmul.f32 %v926_v55, %v505_v18  ;;  %vm509_vm9 = vweird.f32 %v926_v55  ;;  %v533_v50 = vsub.f32 1.0, %v532_v44  ;;  %vm1690_vm10 = vcmp.eq.f32.partialorder %v540_v24, 8.507059e+37  ;;  %vm566_vm12 = vmor %vm564_vm15, %vm565_vm7  ;;  %v1904_v18 = vld [vmem:[#allocation33_spill] sm:$0xff]  ;;  %v1905_v44 = vld [vmem:[#allocation34_spill] sm:$0xff] }
 0x162   : > { %659 = vst.msk [vmem:[%s1516_s16 + $0x70] sm:$0xff] %vm177_vm0, %v623_v59  ;;  %v497_v27 = vsel %vm496_vm8, %v922_v4, %v493_v51  ;;  %v563_v38 = vadd.f32 %v924_v53, %v562_v9  ;;  %vm537_vm11 = vweird.f32 %v928_v58  ;;  %v543_v23 = vor.u32 1.1754944e-38, %v542_v17  ;;  %vm510_vm13 = vmor %vm508_vm2, %vm509_vm9  ;;  %v1891_v4 = vld [vmem:[#allocation16_spill] sm:$0xff] }
 0x163   : > { %v502_v62 = vsel %vm1653_vm1, %v501_v19, %v497_v27  ;;  %v507_v2 = vadd.f32 %v926_v55, %v506_v25  ;;  %v534_v56 = vmul.f32 %v928_v58, %v533_v50  ;;  %v554_v33 = vand.u32 2147483647, %v1663_v45  ;;  %v1892_v19 = vld [vmem:[#allocation29_spill] sm:$0xff]  ;;  %vm538_vm14 = vmor %vm536_vm6, %vm537_vm11  ;;  %v1906_v50 = vld [vmem:[#allocation20_spill] sm:$0xff] }
 0x164   : > { %v930_v5 = vpop.eup %929  ;;  %v591_v21 = vmul.f32 %v1886_v20, %v502_v62  ;;  %v592_v54 = vmul.f32 %v1887_v22, %v502_v62  ;;  %v593_v30 = vmul.f32 %v1888_v15, %v502_v62  ;;  %v567_v7 = vsel %vm566_vm12, %v924_v53, %v563_v38  ;;  %v1907_v38 = vld [vmem:[#allocation21_spill] sm:$0xff] }
 0x165   : > { %v572_v6 = vsel %vm1666_vm4, %v571_v49, %v567_v7  ;;  %v511_v8 = vsel %vm510_vm13, %v926_v55, %v507_v2  ;;  %v535_v32 = vadd.f32 %v928_v58, %v534_v56  ;;  %v546_v35 = vmul.f32 %v930_v5, %v1663_v45  ;;  %v1897_v55 = vld [vmem:[#allocation27_spill] sm:$0xff]  ;;  %v1908_v2 = vld [vmem:[#allocation22_spill] sm:$0xff] }
 0x166   : > { %v627_v10 = vmul.f32 %v591_v21, %v1889_v36  ;;  %v628_v28 = vmul.f32 %v592_v54, %v1890_v57  ;;  %v629_v48 = vmul.f32 %v593_v30, %v1891_v4  ;;  %v606_v11 = vmul.f32 %v1892_v19, %v572_v6  ;;  %v1909_v21 = vld [vmem:[#allocation35_spill] sm:$0xff]  ;;  %v1910_v54 = vld [vmem:[#allocation36_spill] sm:$0xff]  ;;  %v1911_v30 = vld [vmem:[#allocation37_spill] sm:$0xff] }
 0x167   : > { %v607_v12 = vmul.f32 %v1893_v63, %v572_v6  ;;  %v608_v42 = vmul.f32 %v1894_v3, %v572_v6  ;;  %v516_v43 = vsel %vm1678_vm5, %v515_v39, %v511_v8  ;;  %v539_v53 = vsel %vm538_vm14, %v928_v58, %v535_v32  ;;  %v931_v39 = vld [vmem:[%s1131_s24 + $0xb8] sm:$0xff]  ;;  %v934_v32 = vld [vmem:[%s1131_s24 + $0x100] sm:$0xff] }
 0x168   : > { %663 = vst [vmem:[%s1516_s16 + $0x90] sm:$0xff] %v627_v10  ;;  %v642_v14 = vmul.f32 %v606_v11, %v1895_v41  ;;  %v594_v49 = vmul.f32 %v1896_v60, %v516_v43  ;;  %v595_v61 = vmul.f32 %v1897_v55, %v516_v43  ;;  %v596_v0 = vmul.f32 %v1898_v52, %v516_v43  ;;  %v933_v6 = vld [vmem:[%s1131_s24 + $0xf8] sm:$0xff] }
 0x169   : > { %664 = vst [vmem:[%s1516_s16 + $0x98] sm:$0xff] %v628_v28  ;;  %v643_v24 = vmul.f32 %v607_v12, %v1899_v46  ;;  %v644_v34 = vmul.f32 %v608_v42, %v1900_v31  ;;  %v544_v1 = vsel %vm1690_vm10, %v543_v23, %v539_v53  ;;  %v547_v13 = vsub.f32 1.0, %v546_v35 }
 0x16a   : > { %665 = vst.msk [vmem:[%s1516_s16 + $0xa0] sm:$0xff] %vm177_vm0, %v629_v48  ;;  %v630_v59 = vmul.f32 %v594_v49, %v1901_v37  ;;  %v631_v58 = vmul.f32 %v595_v61, %v1902_v47  ;;  %v600_v40 = vmul.f32 %v1903_v16, %v544_v1  ;;  %v556_v17 = vand.u32 2147483648, %v1663_v45 }
 0x16b   : > { %678 = vst [vmem:[%s1516_s16 + $0x108] sm:$0xff] %v642_v14  ;;  %v601_v29 = vmul.f32 %v1904_v18, %v544_v1  ;;  %v602_v51 = vmul.f32 %v1905_v44, %v544_v1  ;;  %v548_v9 = vmul.f32 %v930_v5, %v547_v13  ;;  %vm551_vm15 = vweird.f32 %v930_v5 }
 0x16c   : > { %679 = vst [vmem:[%s1516_s16 + $0x110] sm:$0xff] %v643_v24  ;;  %v632_v25 = vmul.f32 %v931_v39, %v596_v0  ;;  %v636_v26 = vmul.f32 %v600_v40, %v1906_v50  ;;  %vm550_vm1 = vweird.f32 %v1663_v45  ;;  %v557_v62 = vor.u32 1.1754944e-38, %v556_v17 }
 0x16d   : > { %680 = vst.msk [vmem:[%s1516_s16 + $0x118] sm:$0xff] %vm177_vm0, %v644_v34  ;;  %v549_v27 = vadd.f32 %v930_v5, %v548_v9  ;;  %v637_v23 = vmul.f32 %v601_v29, %v1907_v38  ;;  %vm552_vm2 = vmor %vm550_vm1, %vm551_vm15  ;;  %v638_v56 = vmul.f32 %v602_v51, %v1908_v2  ;;  %vm555_vm3 = vcmp.eq.f32.partialorder %v554_v33, 8.507059e+37  ;;  %v932_v33 = vld [vmem:[%s1131_s24 + $0xf0] sm:$0xff] }
 0x16e   : > { %666 = vst [vmem:[%s1516_s16 + $0xa8] sm:$0xff] %v630_v59 }
 0x16f   : > { %667 = vst [vmem:[%s1516_s16 + $0xb0] sm:$0xff] %v631_v58  ;;  %v553_v20 = vsel %vm552_vm2, %v930_v5, %v549_v27 }
 0x170   : > { %668 = vst.msk [vmem:[%s1516_s16 + $0xb8] sm:$0xff] %vm177_vm0, %v632_v25  ;;  %v558_v45 = vsel %vm555_vm3, %v557_v62, %v553_v20 }
 0x171   : > { %672 = vst [vmem:[%s1516_s16 + $0xd8] sm:$0xff] %v636_v26  ;;  %v603_v22 = vmul.f32 %v1909_v21, %v558_v45  ;;  %v604_v15 = vmul.f32 %v1910_v54, %v558_v45  ;;  %v605_v7 = vmul.f32 %v1911_v30, %v558_v45 }
 0x172   : > { %673 = vst [vmem:[%s1516_s16 + $0xe0] sm:$0xff] %v637_v23 }
 0x173   : > { %674 = vst.msk [vmem:[%s1516_s16 + $0xe8] sm:$0xff] %vm177_vm0, %v638_v56  ;;  %v639_v5 = vmul.f32 %v932_v33, %v603_v22  ;;  %v640_v8 = vmul.f32 %v933_v6, %v604_v15  ;;  %v641_v35 = vmul.f32 %v934_v32, %v605_v7 }
 0x175   : > { %675 = vst [vmem:[%s1516_s16 + $0xf0] sm:$0xff] %v639_v5 }
 0x176   : > { %676 = vst [vmem:[%s1516_s16 + $0xf8] sm:$0xff] %v640_v8 }
 0x177   : > { %677 = vst.msk [vmem:[%s1516_s16 + $0x100] sm:$0xff] %vm177_vm0, %v641_v35 }
 0x178   : > { %992 = shalt.err (!%p989_p7)
}
 0x179   : > { %s1035_s14 = smov 384   ;;  %s1036_s19 = smov 24  }
 0x17a   : > { %785 = dma.vmem_to_hbm [thread:$0]  (%p1093_p11), %s696_s27, 4608, %s698_s28, %s682_s29, %s1035_s14, %s1035_s14, %s1036_s19  }
 0x17b PF: > { %s712_s20 = sand.u32 1, %s1019_s6   ;;  %p792_p8 = pnand %p773_p9, %p1097_p12 }
 0x17c   : > { %s713_s21 = scalar_lea.sflag [#allocation4], %s712_s20 }
 0x17d   : > { %p793_p10 = pneg %p792_p8 }
 0x17f   : > { %1014 = dma.done.wait (%p793_p10), %s713_s21, 4608  }
 0x180   : > { %1016 = vsyncadd (%p793_p10), %s713_s21, 4294962688  ;;  %p14_p1 = scmp.ge.s32.totalorder %s1072_s12, 4   ;;  %s1912_s6 = smov %s1023_s7 }
 0x181   : > { %s1913_s7 = smov %s1027_s8  ;;  %s1914_s8 = smov %s1084_s15 }
 0x182   : > { %s1915_s9 = smov %s1072_s12  ;;  %16 = sbr.rel (!%p14_p1) target bundleno = 5 (0x5), region = 69 }
 0x187   :  { %719 = vsyncpa [#allocation3], 1 }
 0x188   :  { %721 = vsyncpa [#allocation3 + $0x1], 1 }
 0x189   :  { %722 = vsyncpa [#allocation4], 1 }
 0x18a   :  { %724 = vsyncpa [#allocation4 + $0x1], 1 }

</bundles_post_ra>
